<compile_context>
chip_gen: v6e
topology: v6e:2x2x1
jax: 0.10.0
libtpu: 0.0.40
codegen_flags: <defaults>
</compile_context>

<pallas_src>
import jax
import jax.numpy as jnp
from jax.experimental import pallas as pl
from jax.experimental.pallas import tpu as pltpu

LANE = 128                  # vreg lane width (last dim of every block)
MAX_BLOCK_BYTES = 4 << 20   # 4 MiB per array per block
MIN_GRID = 4                # keep the pipeline + v7x 2-TC sharding alive
SMALL_BYTES = 256 << 10     # below this, fused XLA elementwise beats pallas_call


def _disc_loss_kernel(fake_ref, real_ref, out_ref):
    # Elementwise hot path: tmp = fake + real ; loss = 1 - tmp
    out_ref[...] = (1 - (fake_ref[...] + real_ref[...])).astype(out_ref.dtype)


def _round_up(x, m):
    return ((x + m - 1) // m) * m


def descriminator_loss(fake_SR_D_result, real_Hr_D_result):
    """Pallas equivalent of DescriminatorLoss.forward (returns the full map)."""
    assert fake_SR_D_result.shape == real_Hr_D_result.shape
    assert fake_SR_D_result.dtype == real_Hr_D_result.dtype

    orig_shape = fake_SR_D_result.shape
    dtype = fake_SR_D_result.dtype
    itemsize = jnp.dtype(dtype).itemsize
    n = fake_SR_D_result.size

    # ---- fast path: tiny inputs -> plain fused elementwise -----------------
    if n * itemsize < SMALL_BYTES:
        return (1 - (fake_SR_D_result + real_Hr_D_result)).astype(dtype)

    # ---- dtype-aware lane/sublane-dense layout ------------------------------
    # Sublane packing: 8 rows for 4-byte, 16 for 2-byte, 32 for 1-byte dtypes.
    sub = max(8, 8 * (4 // itemsize))
    rows_needed = pl.cdiv(n, LANE)
    rows_aligned = _round_up(rows_needed, sub)
    n_pad = rows_aligned * LANE          # pad is at most sub*LANE - 1 elements

    # ---- block-row choice ----------------------------------------------------
    # Big enough to amortize per-step overhead, small enough for >= MIN_GRID
    # steps; block bytes capped at 4 MiB/array.
    max_rows = max(sub, MAX_BLOCK_BYTES // (LANE * itemsize))
    tr = min(max_rows, _round_up(pl.cdiv(rows_aligned, MIN_GRID), sub))
    grid = (pl.cdiv(rows_aligned, tr),)  # ragged last block handled by Pallas

    fake_flat = fake_SR_D_result.reshape(-1)
    real_flat = real_Hr_D_result.reshape(-1)
    if n_pad != n:
        fake_flat = jnp.pad(fake_flat, (0, n_pad - n))
        real_flat = jnp.pad(real_flat, (0, n_pad - n))

    fake2d = fake_flat.reshape(rows_aligned, LANE)
    real2d = real_flat.reshape(rows_aligned, LANE)

    # 3 arrays x 2 pipeline buffers x block, plus a little headroom; cap for v7x.
    block_bytes = tr * LANE * itemsize
    vmem_limit = int(min(48 << 20, max(16 << 20, 6 * block_bytes + (2 << 20))))

    out2d = pl.pallas_call(
        _disc_loss_kernel,
        out_shape=jax.ShapeDtypeStruct((rows_aligned, LANE), dtype),
        grid_spec=pltpu.PrefetchScalarGridSpec(
            num_scalar_prefetch=0,
            grid=grid,
            in_specs=[
                pl.BlockSpec((tr, LANE), lambda i: (i, 0)),
                pl.BlockSpec((tr, LANE), lambda i: (i, 0)),
            ],
            out_specs=pl.BlockSpec((tr, LANE), lambda i: (i, 0)),
        ),
        compiler_params=pltpu.CompilerParams(
            dimension_semantics=("parallel",),
            vmem_limit_bytes=vmem_limit,
        ),
        cost_estimate=pl.CostEstimate(
            flops=2 * n_pad,
            transcendentals=0,
            bytes_accessed=3 * n_pad * itemsize,
        ),
    )(fake2d, real2d)

    out_flat = out2d.reshape(-1)
    if n_pad != n:
        out_flat = out_flat[:n]
    return out_flat.reshape(orig_shape)


if __name__ == "__main__":
    key = jax.random.PRNGKey(0)
    k1, k2, k3, k4, k5, k6 = jax.random.split(key, 6)

    # 1) Small PatchGAN-style map (2,1,16,16): exercises the tiny-input fast path.
    shape_small = (2, 1, 16, 16)
    fake_s = jax.random.normal(k1, shape_small, dtype=jnp.float32)
    real_s = jax.random.normal(k2, shape_small, dtype=jnp.float32)
    loss_s = descriminator_loss(fake_s, real_s)
    jax.block_until_ready(loss_s)
    ref_s = 1.0 - (fake_s + real_s)
    assert loss_s.shape == ref_s.shape
    assert jnp.allclose(loss_s, ref_s, atol=1e-6), "small-shape mismatch vs reference"

    # 2) Nicely-sized map (4,1,256,256): Pallas path, 4-block grid, no pad/slice.
    shape_mid = (4, 1, 256, 256)
    fake_m = jax.random.normal(k3, shape_mid, dtype=jnp.float32)
    real_m = jax.random.normal(k4, shape_mid, dtype=jnp.float32)
    loss_m = descriminator_loss(fake_m, real_m)
    jax.block_until_ready(loss_m)
    ref_m = 1.0 - (fake_m + real_m)
    assert loss_m.shape == ref_m.shape
    assert jnp.allclose(loss_m, ref_m, atol=1e-6), "mid-shape mismatch vs reference"

    # 3) Ragged map (2,3,150,151): Pallas path with a partial edge block and a
    #    tiny (< sub*128 elems) sublane-boundary pad.
    shape_rag = (2, 3, 150, 151)
    fake_r = jax.random.normal(k5, shape_rag, dtype=jnp.float32)
    real_r = jax.random.normal(k6, shape_rag, dtype=jnp.float32)
    loss_r = descriminator_loss(fake_r, real_r)
    jax.block_until_ready(loss_r)
    ref_r = 1.0 - (fake_r + real_r)
    assert loss_r.shape == ref_r.shape
    assert jnp.allclose(loss_r, ref_r, atol=1e-6), "ragged-shape mismatch vs reference"

    print("KERNEL_OK")
</pallas_src>

<mosaic_0001>
module attributes {stable_mosaic.version = 11 : i64} {
  func.func @_disc_loss_kernel(%arg0: i32, %arg1: memref<512x128xf32, #tpu.memory_space<vmem>>, %arg2: memref<512x128xf32, #tpu.memory_space<vmem>>, %arg3: memref<512x128xf32, #tpu.memory_space<vmem>>) attributes {dimension_semantics = [#tpu.dimension_semantics<parallel>], iteration_bounds = array<i64: 4>, scalar_prefetch = 0 : i64, scratch_operands = 0 : i64, tpu.core_type = #tpu.core_type<tc>, window_params = [{transform_indices = @transform_0, window_bounds = array<i64: 512, 128>}, {transform_indices = @transform_1, window_bounds = array<i64: 512, 128>}, {transform_indices = @transform_2, window_bounds = array<i64: 512, 128>}]} {
    %c0 = arith.constant 0 : index
    %c0_0 = arith.constant 0 : index
    %0 = vector.load %arg1[%c0, %c0_0] : memref<512x128xf32, #tpu.memory_space<vmem>>, vector<512x128xf32>
    %c0_1 = arith.constant 0 : index
    %c0_2 = arith.constant 0 : index
    %1 = vector.load %arg2[%c0_1, %c0_2] : memref<512x128xf32, #tpu.memory_space<vmem>>, vector<512x128xf32>
    %2 = arith.addf %0, %1 : vector<512x128xf32>
    %cst = arith.constant 1.000000e+00 : f32
    %3 = vector.broadcast %cst : f32 to vector<512x128xf32>
    %4 = arith.subf %3, %2 : vector<512x128xf32>
    %c0_3 = arith.constant 0 : index
    %c0_4 = arith.constant 0 : index
    %5 = vector.load %arg3[%c0_3, %c0_4] : memref<512x128xf32, #tpu.memory_space<vmem>>, vector<512x128xf32>
    tpu.vector_store %arg3[%c0_3, %c0_4], %4 {strides = array<i32>} : memref<512x128xf32, #tpu.memory_space<vmem>>, vector<512x128xf32>,
    return
  }
  func.func @transform_0(%arg0: i32) -> (i32, i32) {
    %c0_i32 = arith.constant 0 : i32
    %c0_i32_0 = arith.constant 0 : i32
    return %arg0, %c0_i32 : i32, i32
  }
  func.func @transform_1(%arg0: i32) -> (i32, i32) {
    %c0_i32 = arith.constant 0 : i32
    %c0_i32_0 = arith.constant 0 : i32
    return %arg0, %c0_i32 : i32, i32
  }
  func.func @transform_2(%arg0: i32) -> (i32, i32) {
    %c0_i32 = arith.constant 0 : i32
    %c0_i32_0 = arith.constant 0 : i32
    return %arg0, %c0_i32 : i32, i32
  }
}

</mosaic_0001>

<bundles_post_ra>
// kernel: tpu_custom_call.1
= control target key start
LH: loop header
LB: loop body
LE: loop exit
PB: predicated region body
PF: predicated region fallthrough
CT: control target
= control target key end

     0   :  { %7 = vsyncpa [#allocation3], 0  ;;  %s1279_s0 = inlined_call_operand.hbm [shape: f32[2048,128], index: 0, kind: input, shape index: {}]   ;;  %s1280_s1 = inlined_call_operand.hbm [shape: f32[2048,128], index: 1, kind: input, shape index: {}]   ;;  %s1281_s2 = inlined_call_operand.hbm [shape: f32[2048,128], index: 2, kind: output, shape index: {}]  }
   0x1   :  { %9 = vsyncpa [#allocation3 + $0x1], 0 }
   0x2   :  { %10 = vsyncpa [#allocation6], 0 }
   0x3   :  { %12 = vsyncpa [#allocation6 + $0x1], 0 }
   0x4   :  { %13 = vsyncpa [#allocation4], 0 }
   0x5   :  { %15 = vsyncpa [#allocation4 + $0x1], 0  ;;  %s859_s9 = smov 0   ;;  %s861_s10 = smov 0  }
   0x6   :  { %s863_s11 = smov 0   ;;  %s865_s12 = smov 0  }
   0x7 LB: > { %s880_s13 = sadd.s32 4294967295, %s835_s12   ;;  %s635_s14 = sadd.s32 4294967294, %s835_s12   ;;  %s835_s12 = sphi %s865_s12, %s1296_s12   ;;  %s831_s11 = sphi %s863_s11, %s1295_s11   ;;  %s827_s10 = sphi %s861_s10, %s1294_s10   ;;  %s823_s9 = sphi %s859_s9, %s1293_s9  }
   0x8   : > { %s884_s15 = sadd.s32 1, %s835_s12   ;;  %s28_s16 = sadd.s32 1, %s831_s11 }
   0x9   : > { %s25_s17 = ssub.s32 %s835_s12, %s884_s15  ;;  %p35_p0 = scmp.ne.s32.totalorder %s831_s11, %s827_s10 }
   0xa   : > { %p26_p1 = scmp.eq.s32.totalorder %s25_s17, 0  ;;  %p36_p2 = scmp.eq.s32.totalorder %s835_s12, 0 }
   0xb   : > { %p41_p3 = scmp.ne.s32.totalorder %s827_s10, %s823_s9  ;;  %p42_p4 = scmp.eq.s32.totalorder %s880_s13, 0 }
   0xc   : > { %s896_s18 = scalar_select %p26_p1, %s831_s11, %s28_s16  }
   0xd   : > { %p898_p5 = por %p36_p2, %p35_p0  ;;  %p902_p6 = por %p42_p4, %p41_p3 }
   0xe   : > { %p91_p7 = scmp.eq.s32.totalorder %s880_s13, 3  ;;  %p97_p8 = scmp.eq.s32.totalorder %s635_s14, 3 }
   0xf   : > { %s1285_s20 = scalar_select %p902_p6, 1, 0 }
  0x10   : > { %p673_p9 = scmp.lt.s32.totalorder %s835_s12, 4  ;;  %p908_p10 = por %p91_p7, %p35_p0 }
  0x11   : > { %p912_p11 = por %p97_p8, %p41_p3  ;;  %s917_s23 = sand.u32 1, %s831_s11  }
  0x12   : > { %s1286_s21 = scalar_select %p908_p10, 1, 0 }
  0x13   : > { %s1287_s22 = scalar_select %p912_p11, 1, 0 }
  0x14   : > { %s653_s24 = sshll.u32 %s835_s12, 13  ;;  %s638_s25 = sshll.u32 %s917_s23, 9 }
  0x15   : > { %s926_s28 = scalar_lea.hbm %s1279_s0, %s653_s24  ;;  %s121_s29 = scalar_lea.vmem [#allocation2], %s638_s25 }
  0x16   : > { %s128_s30 = sshll.u32 %s121_s29, 4  ;;  %p932_p12 = pnand %p673_p9, %p898_p5  ;;  %s936_s30 = int_to_ptr.vmem [resolvable:$true] %s128_s30 }
  0x17   : > { %s118_s4 = scalar_lea.sflag [#allocation3], %s917_s23  ;;  %s711_s5 = scalar_lea.hbm %s926_s28, 8192 }
  0x18   : > { %p712_p13 = scmp.ne.s32.totalorder %s926_s28, %s711_s5  ;;  %p713_p0 = pneg %p932_p12 }
  0x19   : > { %s716_s8 = scalar_lea.hbm %s1279_s0, 32768  ;;  %p717_p3 = scmp.lt.s32.totalorder %s926_s28, %s1279_s0 }
  0x1a   : > { %p714_p1 = pnand %p713_p0, %p712_p13  ;;  %p718_p4 = scmp.lt.s32.totalorder %s716_s8, %s711_s5 }
  0x1c   : > { %p715_p2 = pneg %p714_p1  ;;  %p719_p5 = por %p718_p4, %p717_p3 }
  0x1e   : > { %p720_p7 = pnand %p719_p5, %p715_p2 }
  0x20   : > { %723 = shalt.err (!%p720_p7)
}
  0x21   : > { %s724_s17 = scalar_lea.vmem %s936_s30, 8192  ;;  %s837_s19 = smov [#allocation2]  }
  0x22   : > { %p725_p8 = scmp.ne.s32.totalorder %s936_s30, %s724_s17  ;;  %s729_s26 = sshll.u32 %s837_s19, 4  ;;  %s730_s26 = int_to_ptr.vmem [resolvable:$false] %s729_s26 }
  0x23   : > { %s731_s27 = scalar_lea.vmem %s730_s26, 16384  ;;  %p732_p1 = scmp.lt.s32.totalorder %s936_s30, %s730_s26 }
  0x24   : > { %p727_p9 = pnand %p725_p8, %p713_p0  ;;  %p733_p11 = scmp.lt.s32.totalorder %s731_s27, %s724_s17 }
  0x26   : > { %p728_p13 = pneg %p727_p9  ;;  %p734_p10 = por %p733_p11, %p732_p1 }
  0x28   : > { %p735_p3 = pnand %p734_p10, %p728_p13 }
  0x2a   : > { %738 = shalt.err (!%p735_p3)
}
  0x2b   : > { %s838_s29 = smov 128   ;;  %s839_s5 = smov 8  }
  0x2c   : > { %665 = dma.hbm_to_vmem [thread:$0]  (!%p932_p12), %s926_s28, 8192, %s936_s30, %s118_s4, %s838_s29, %s838_s29, %s839_s5  }
  0x2d   : > { %p644_p10 = scmp.ge.s32.totalorder %s835_s12, 1  ;;  %p157_p11 = scmp.lt.s32.totalorder %s835_s12, 5 }
  0x2e   : > { %s979_s14 = scalar_lea.hbm %s1280_s1, %s653_s24  ;;  %s142_s16 = scalar_lea.vmem [#allocation5], %s638_s25 }
  0x2f   : > { %p970_p2 = pnand %p644_p10, %p157_p11  ;;  %s149_s17 = sshll.u32 %s142_s16, 4  ;;  %s983_s17 = int_to_ptr.vmem [resolvable:$true] %s149_s17 }
  0x30   : > { %s139_s28 = scalar_lea.sflag [#allocation6], %s917_s23  ;;  %s739_s30 = scalar_lea.hbm %s979_s14, 8192 }
  0x31   : > { %p740_p4 = scmp.ne.s32.totalorder %s979_s14, %s739_s30  ;;  %s744_s24 = scalar_lea.hbm %s1280_s1, 32768 }
  0x32   : > { %p745_p8 = scmp.lt.s32.totalorder %s979_s14, %s1280_s1  ;;  %p746_p9 = scmp.lt.s32.totalorder %s744_s24, %s739_s30 }
  0x33   : > { %p742_p5 = pnand %p740_p4, %p713_p0 }
  0x34   : > { %p747_p13 = por %p746_p9, %p745_p8 }
  0x35   : > { %p743_p7 = pneg %p742_p5 }
  0x37   : > { %p748_p1 = pnand %p747_p13, %p743_p7 }
  0x39   : > { %751 = shalt.err (!%p748_p1)
}
  0x3a   : > { %s752_s23 = scalar_lea.vmem %s983_s17, 8192  ;;  %s840_s25 = smov [#allocation5]  }
  0x3b   : > { %p753_p3 = scmp.ne.s32.totalorder %s983_s17, %s752_s23  ;;  %s757_s7 = sshll.u32 %s840_s25, 4  ;;  %s758_s7 = int_to_ptr.vmem [resolvable:$false] %s757_s7 }
  0x3c   : > { %s759_s8 = scalar_lea.vmem %s758_s7, 16384  ;;  %p760_p4 = scmp.lt.s32.totalorder %s983_s17, %s758_s7 }
  0x3d   : > { %p755_p10 = pnand %p753_p3, %p713_p0  ;;  %p761_p5 = scmp.lt.s32.totalorder %s759_s8, %s752_s23 }
  0x3f   : > { %p756_p11 = pneg %p755_p10  ;;  %p762_p6 = por %p761_p5, %p760_p4 }
  0x41   : > { %p763_p8 = pnand %p762_p6, %p756_p11 }
  0x43   : > { %766 = shalt.err (!%p763_p8)
}
  0x44   : > { %668 = dma.hbm_to_vmem [thread:$0]  (!%p932_p12), %s979_s14, 8192, %s983_s17, %s139_s28, %s838_s29, %s838_s29, %s839_s5  }
  0x45   : > { %161 = sbr.rel (%p970_p2) target bundleno = 145 (0x91), region = 28  ;;  %s1014_s16 = sand.u32 (!%p970_p2), 1, %s827_s10  }
  0x46   : > { %s1017_s30 = sshll.u32 (!%p970_p2), %s1014_s16, 9  ;;  %s164_s4 = scalar_lea.sflag (!%p970_p2), [#allocation3], %s1014_s16 }
  0x47   : > { %s1021_s3 = scalar_lea.vmem (!%p970_p2), [#allocation2], %s1017_s30  ;;  %p1290_p6 = scmp.ne.s32.totalorder (!%p970_p2), %s1285_s20, 0 }
  0x4a   : > { %810 = dma.done.wait (%p1290_p6), %s164_s4, 8192  }
  0x4b   : > { %812 = vsyncadd (%p1290_p6), %s164_s4, 4294959104  ;;  %s173_s29 = scalar_lea.sflag [#allocation6], %s1014_s16  ;;  %s1029_s5 = scalar_lea.vmem [#allocation5], %s1017_s30 }
  0x4c   : > { %814 = dma.done.wait (%p1290_p6), %s173_s29, 8192  }
  0x4d   : > { %816 = vsyncadd (%p1290_p6), %s173_s29, 4294959104  ;;  %v205_v0 = vld [vmem:[%s1021_s3] sm:$0xff]  ;;  %v206_v2 = vld [vmem:[%s1021_s3 + $0x8] sm:$0xff]  ;;  %s1051_s20 = scalar_lea.vmem [#allocation7], %s1017_s30  ;;  %s655_s6 = sshll.u32 %s880_s13, 13 }
  0x4e   : > { %v269_v1 = vld [vmem:[%s1029_s5] sm:$0xff]  ;;  %v270_v4 = vld [vmem:[%s1029_s5 + $0x8] sm:$0xff]  ;;  %v207_v5 = vld [vmem:[%s1021_s3 + $0x10] sm:$0xff]  ;;  %s539_s14 = sshll.u32 %s1051_s20, 4  ;;  %s1231_s28 = scalar_lea.hbm %s1281_s2, %s655_s6  ;;  %s1233_s14 = int_to_ptr.vmem [resolvable:$true] %s539_s14 }
  0x4f   : > { %v333_v3 = vadd.f32 %v269_v1, %v205_v0  ;;  %v271_v6 = vld [vmem:[%s1029_s5 + $0x10] sm:$0xff]  ;;  %v334_v7 = vadd.f32 %v270_v4, %v206_v2  ;;  %v208_v9 = vld [vmem:[%s1021_s3 + $0x18] sm:$0xff]  ;;  %v209_v11 = vld [vmem:[%s1021_s3 + $0x20] sm:$0xff]  ;;  %s526_s19 = scalar_lea.sflag [#allocation4], %s1014_s16  ;;  %s767_s24 = scalar_lea.vmem %s1233_s14, 8192 }
  0x50   : > { %v335_v8 = vadd.f32 %v271_v6, %v207_v5  ;;  %v272_v10 = vld [vmem:[%s1029_s5 + $0x18] sm:$0xff]  ;;  %v273_v14 = vld [vmem:[%s1029_s5 + $0x20] sm:$0xff]  ;;  %v210_v15 = vld [vmem:[%s1021_s3 + $0x28] sm:$0xff]  ;;  %p768_p12 = scmp.ne.s32.totalorder %s1233_s14, %s767_s24  ;;  %p1291_p0 = scmp.ne.s32.totalorder %s1286_s21, 0 }
  0x51   : > { %v397_v12 = vsub.f32 1.0, %v333_v3  ;;  %v336_v13 = vadd.f32 %v272_v10, %v208_v9  ;;  %v274_v16 = vld [vmem:[%s1029_s5 + $0x28] sm:$0xff]  ;;  %v398_v17 = vsub.f32 1.0, %v334_v7  ;;  %v337_v19 = vadd.f32 %v273_v14, %v209_v11  ;;  %v211_v21 = vld [vmem:[%s1021_s3 + $0x30] sm:$0xff]  ;;  %v212_v23 = vld [vmem:[%s1021_s3 + $0x38] sm:$0xff]  ;;  %s841_s26 = smov [#allocation7]  }
  0x52   : > { %v399_v18 = vsub.f32 1.0, %v335_v8  ;;  %v338_v20 = vadd.f32 %v274_v16, %v210_v15  ;;  %v275_v22 = vld [vmem:[%s1029_s5 + $0x30] sm:$0xff]  ;;  %v276_v26 = vld [vmem:[%s1029_s5 + $0x38] sm:$0xff]  ;;  %v213_v27 = vld [vmem:[%s1021_s3 + $0x40] sm:$0xff]  ;;  %p769_p2 = pnand %p768_p12, %p1291_p0  ;;  %s771_s27 = sshll.u32 %s841_s26, 4  ;;  %s772_s27 = int_to_ptr.vmem [resolvable:$false] %s771_s27 }
  0x53   : > { %461 = vst [vmem:[%s1051_s20] sm:$0xff] %v397_v12  ;;  %v400_v24 = vsub.f32 1.0, %v336_v13  ;;  %v339_v25 = vadd.f32 %v275_v22, %v211_v21  ;;  %v277_v28 = vld [vmem:[%s1029_s5 + $0x40] sm:$0xff]  ;;  %462 = vst [vmem:[%s1051_s20 + $0x8] sm:$0xff] %v398_v17  ;;  %v401_v29 = vsub.f32 1.0, %v337_v19  ;;  %v340_v31 = vadd.f32 %v276_v26, %v212_v23  ;;  %v214_v33 = vld [vmem:[%s1021_s3 + $0x48] sm:$0xff]  ;;  %s773_s23 = scalar_lea.vmem %s772_s27, 16384  ;;  %p774_p9 = scmp.lt.s32.totalorder %s1233_s14, %s772_s27 }
  0x54   : > { %463 = vst [vmem:[%s1051_s20 + $0x10] sm:$0xff] %v399_v18  ;;  %v402_v30 = vsub.f32 1.0, %v338_v20  ;;  %v341_v32 = vadd.f32 %v277_v28, %v213_v27  ;;  %v278_v34 = vld [vmem:[%s1029_s5 + $0x48] sm:$0xff]  ;;  %v215_v35 = vld [vmem:[%s1021_s3 + $0x50] sm:$0xff]  ;;  %v216_v39 = vld [vmem:[%s1021_s3 + $0x58] sm:$0xff]  ;;  %p770_p7 = pneg %p769_p2  ;;  %p775_p13 = scmp.lt.s32.totalorder %s773_s23, %s767_s24 }
  0x55   : > { %464 = vst [vmem:[%s1051_s20 + $0x18] sm:$0xff] %v400_v24  ;;  %v403_v36 = vsub.f32 1.0, %v339_v25  ;;  %v342_v37 = vadd.f32 %v278_v34, %v214_v33  ;;  %v279_v38 = vld [vmem:[%s1029_s5 + $0x50] sm:$0xff]  ;;  %v280_v40 = vld [vmem:[%s1029_s5 + $0x58] sm:$0xff]  ;;  %465 = vst [vmem:[%s1051_s20 + $0x20] sm:$0xff] %v401_v29  ;;  %v404_v41 = vsub.f32 1.0, %v340_v31 }
  0x56   : > { %466 = vst [vmem:[%s1051_s20 + $0x28] sm:$0xff] %v402_v30  ;;  %v405_v42 = vsub.f32 1.0, %v341_v32  ;;  %v343_v43 = vadd.f32 %v279_v38, %v215_v35  ;;  %v344_v44 = vadd.f32 %v280_v40, %v216_v39  ;;  %v217_v45 = vld [vmem:[%s1021_s3 + $0x60] sm:$0xff]  ;;  %v218_v47 = vld [vmem:[%s1021_s3 + $0x68] sm:$0xff]  ;;  %v219_v51 = vld [vmem:[%s1021_s3 + $0x70] sm:$0xff]  ;;  %p776_p1 = por %p775_p13, %p774_p9 }
  0x57   : > { %v281_v46 = vld [vmem:[%s1029_s5 + $0x60] sm:$0xff]  ;;  %467 = vst [vmem:[%s1051_s20 + $0x30] sm:$0xff] %v403_v36  ;;  %v406_v48 = vsub.f32 1.0, %v342_v37  ;;  %v282_v50 = vld [vmem:[%s1029_s5 + $0x68] sm:$0xff]  ;;  %v283_v52 = vld [vmem:[%s1029_s5 + $0x70] sm:$0xff] }
  0x58   : > { %v345_v49 = vadd.f32 %v281_v46, %v217_v45  ;;  %468 = vst [vmem:[%s1051_s20 + $0x38] sm:$0xff] %v404_v41  ;;  %469 = vst [vmem:[%s1051_s20 + $0x40] sm:$0xff] %v405_v42  ;;  %v407_v53 = vsub.f32 1.0, %v343_v43  ;;  %v408_v54 = vsub.f32 1.0, %v344_v44  ;;  %v346_v55 = vadd.f32 %v282_v50, %v218_v47  ;;  %v220_v57 = vld [vmem:[%s1021_s3 + $0x78] sm:$0xff]  ;;  %v221_v59 = vld [vmem:[%s1021_s3 + $0x80] sm:$0xff]  ;;  %p777_p3 = pnand %p776_p1, %p770_p7 }
  0x59   : > { %v347_v56 = vadd.f32 %v283_v52, %v219_v51  ;;  %v284_v58 = vld [vmem:[%s1029_s5 + $0x78] sm:$0xff]  ;;  %470 = vst [vmem:[%s1051_s20 + $0x48] sm:$0xff] %v406_v48  ;;  %v285_v62 = vld [vmem:[%s1029_s5 + $0x80] sm:$0xff]  ;;  %v222_v63 = vld [vmem:[%s1021_s3 + $0x88] sm:$0xff] }
  0x5a   : > { %v409_v60 = vsub.f32 1.0, %v345_v49  ;;  %v348_v61 = vadd.f32 %v284_v58, %v220_v57  ;;  %v286_v0 = vld [vmem:[%s1029_s5 + $0x88] sm:$0xff]  ;;  %471 = vst [vmem:[%s1051_s20 + $0x50] sm:$0xff] %v407_v53  ;;  %472 = vst [vmem:[%s1051_s20 + $0x58] sm:$0xff] %v408_v54  ;;  %v410_v1 = vsub.f32 1.0, %v346_v55  ;;  %v349_v3 = vadd.f32 %v285_v62, %v221_v59  ;;  %v223_v5 = vld [vmem:[%s1021_s3 + $0x90] sm:$0xff] }
  0x5b   : > { %v411_v2 = vsub.f32 1.0, %v347_v56  ;;  %v350_v4 = vadd.f32 %v286_v0, %v222_v63  ;;  %v287_v6 = vld [vmem:[%s1029_s5 + $0x90] sm:$0xff]  ;;  %v224_v7 = vld [vmem:[%s1021_s3 + $0x98] sm:$0xff]  ;;  %v225_v11 = vld [vmem:[%s1021_s3 + $0xa0] sm:$0xff] }
  0x5c   : > { %473 = vst [vmem:[%s1051_s20 + $0x60] sm:$0xff] %v409_v60  ;;  %v412_v8 = vsub.f32 1.0, %v348_v61  ;;  %v351_v9 = vadd.f32 %v287_v6, %v223_v5  ;;  %v288_v10 = vld [vmem:[%s1029_s5 + $0x98] sm:$0xff]  ;;  %v289_v12 = vld [vmem:[%s1029_s5 + $0xa0] sm:$0xff]  ;;  %474 = vst [vmem:[%s1051_s20 + $0x68] sm:$0xff] %v410_v1  ;;  %v413_v13 = vsub.f32 1.0, %v349_v3 }
  0x5d   : > { %475 = vst [vmem:[%s1051_s20 + $0x70] sm:$0xff] %v411_v2  ;;  %v414_v14 = vsub.f32 1.0, %v350_v4  ;;  %v352_v15 = vadd.f32 %v288_v10, %v224_v7  ;;  %v353_v16 = vadd.f32 %v289_v12, %v225_v11  ;;  %v226_v17 = vld [vmem:[%s1021_s3 + $0xa8] sm:$0xff]  ;;  %v227_v19 = vld [vmem:[%s1021_s3 + $0xb0] sm:$0xff]  ;;  %v228_v23 = vld [vmem:[%s1021_s3 + $0xb8] sm:$0xff] }
  0x5e   : > { %v290_v18 = vld [vmem:[%s1029_s5 + $0xa8] sm:$0xff]  ;;  %476 = vst [vmem:[%s1051_s20 + $0x78] sm:$0xff] %v412_v8  ;;  %v415_v20 = vsub.f32 1.0, %v351_v9  ;;  %v291_v22 = vld [vmem:[%s1029_s5 + $0xb0] sm:$0xff]  ;;  %v292_v24 = vld [vmem:[%s1029_s5 + $0xb8] sm:$0xff] }
  0x5f   : > { %v354_v21 = vadd.f32 %v290_v18, %v226_v17  ;;  %477 = vst [vmem:[%s1051_s20 + $0x80] sm:$0xff] %v413_v13  ;;  %478 = vst [vmem:[%s1051_s20 + $0x88] sm:$0xff] %v414_v14  ;;  %v416_v25 = vsub.f32 1.0, %v352_v15  ;;  %v417_v26 = vsub.f32 1.0, %v353_v16  ;;  %v355_v27 = vadd.f32 %v291_v22, %v227_v19  ;;  %v229_v29 = vld [vmem:[%s1021_s3 + $0xc0] sm:$0xff]  ;;  %v230_v31 = vld [vmem:[%s1021_s3 + $0xc8] sm:$0xff] }
  0x60   : > { %v356_v28 = vadd.f32 %v292_v24, %v228_v23  ;;  %v293_v30 = vld [vmem:[%s1029_s5 + $0xc0] sm:$0xff]  ;;  %479 = vst [vmem:[%s1051_s20 + $0x90] sm:$0xff] %v415_v20  ;;  %v294_v34 = vld [vmem:[%s1029_s5 + $0xc8] sm:$0xff]  ;;  %v231_v35 = vld [vmem:[%s1021_s3 + $0xd0] sm:$0xff] }
  0x61   : > { %v418_v32 = vsub.f32 1.0, %v354_v21  ;;  %v357_v33 = vadd.f32 %v293_v30, %v229_v29  ;;  %v295_v36 = vld [vmem:[%s1029_s5 + $0xd0] sm:$0xff]  ;;  %480 = vst [vmem:[%s1051_s20 + $0x98] sm:$0xff] %v416_v25  ;;  %481 = vst [vmem:[%s1051_s20 + $0xa0] sm:$0xff] %v417_v26  ;;  %v419_v37 = vsub.f32 1.0, %v355_v27  ;;  %v358_v39 = vadd.f32 %v294_v34, %v230_v31  ;;  %v232_v41 = vld [vmem:[%s1021_s3 + $0xd8] sm:$0xff] }
  0x62   : > { %v420_v38 = vsub.f32 1.0, %v356_v28  ;;  %v359_v40 = vadd.f32 %v295_v36, %v231_v35  ;;  %v296_v42 = vld [vmem:[%s1029_s5 + $0xd8] sm:$0xff]  ;;  %v233_v43 = vld [vmem:[%s1021_s3 + $0xe0] sm:$0xff]  ;;  %v234_v47 = vld [vmem:[%s1021_s3 + $0xe8] sm:$0xff] }
  0x63   : > { %482 = vst [vmem:[%s1051_s20 + $0xa8] sm:$0xff] %v418_v32  ;;  %v421_v44 = vsub.f32 1.0, %v357_v33  ;;  %v360_v45 = vadd.f32 %v296_v42, %v232_v41  ;;  %v297_v46 = vld [vmem:[%s1029_s5 + $0xe0] sm:$0xff]  ;;  %v298_v48 = vld [vmem:[%s1029_s5 + $0xe8] sm:$0xff]  ;;  %483 = vst [vmem:[%s1051_s20 + $0xb0] sm:$0xff] %v419_v37  ;;  %v422_v49 = vsub.f32 1.0, %v358_v39 }
  0x64   : > { %484 = vst [vmem:[%s1051_s20 + $0xb8] sm:$0xff] %v420_v38  ;;  %v423_v50 = vsub.f32 1.0, %v359_v40  ;;  %v361_v51 = vadd.f32 %v297_v46, %v233_v43  ;;  %v362_v52 = vadd.f32 %v298_v48, %v234_v47  ;;  %v235_v53 = vld [vmem:[%s1021_s3 + $0xf0] sm:$0xff]  ;;  %v236_v55 = vld [vmem:[%s1021_s3 + $0xf8] sm:$0xff]  ;;  %v237_v59 = vld [vmem:[%s1021_s3 + $0x100] sm:$0xff] }
  0x65   : > { %v299_v54 = vld [vmem:[%s1029_s5 + $0xf0] sm:$0xff]  ;;  %485 = vst [vmem:[%s1051_s20 + $0xc0] sm:$0xff] %v421_v44  ;;  %v424_v56 = vsub.f32 1.0, %v360_v45  ;;  %v300_v58 = vld [vmem:[%s1029_s5 + $0xf8] sm:$0xff]  ;;  %v301_v60 = vld [vmem:[%s1029_s5 + $0x100] sm:$0xff] }
  0x66   : > { %v363_v57 = vadd.f32 %v299_v54, %v235_v53  ;;  %486 = vst [vmem:[%s1051_s20 + $0xc8] sm:$0xff] %v422_v49  ;;  %487 = vst [vmem:[%s1051_s20 + $0xd0] sm:$0xff] %v423_v50  ;;  %v425_v61 = vsub.f32 1.0, %v361_v51  ;;  %v426_v62 = vsub.f32 1.0, %v362_v52  ;;  %v364_v63 = vadd.f32 %v300_v58, %v236_v55  ;;  %v238_v1 = vld [vmem:[%s1021_s3 + $0x108] sm:$0xff]  ;;  %v239_v3 = vld [vmem:[%s1021_s3 + $0x110] sm:$0xff] }
  0x67   : > { %v365_v0 = vadd.f32 %v301_v60, %v237_v59  ;;  %v302_v2 = vld [vmem:[%s1029_s5 + $0x108] sm:$0xff]  ;;  %488 = vst [vmem:[%s1051_s20 + $0xd8] sm:$0xff] %v424_v56  ;;  %v303_v6 = vld [vmem:[%s1029_s5 + $0x110] sm:$0xff]  ;;  %v240_v7 = vld [vmem:[%s1021_s3 + $0x118] sm:$0xff] }
  0x68   : > { %v427_v4 = vsub.f32 1.0, %v363_v57  ;;  %v366_v5 = vadd.f32 %v302_v2, %v238_v1  ;;  %v304_v8 = vld [vmem:[%s1029_s5 + $0x118] sm:$0xff]  ;;  %489 = vst [vmem:[%s1051_s20 + $0xe0] sm:$0xff] %v425_v61  ;;  %490 = vst [vmem:[%s1051_s20 + $0xe8] sm:$0xff] %v426_v62  ;;  %v428_v9 = vsub.f32 1.0, %v364_v63  ;;  %v367_v11 = vadd.f32 %v303_v6, %v239_v3  ;;  %v241_v13 = vld [vmem:[%s1021_s3 + $0x120] sm:$0xff] }
  0x69   : > { %v429_v10 = vsub.f32 1.0, %v365_v0  ;;  %v368_v12 = vadd.f32 %v304_v8, %v240_v7  ;;  %v305_v14 = vld [vmem:[%s1029_s5 + $0x120] sm:$0xff]  ;;  %v242_v15 = vld [vmem:[%s1021_s3 + $0x128] sm:$0xff]  ;;  %v243_v19 = vld [vmem:[%s1021_s3 + $0x130] sm:$0xff] }
  0x6a   : > { %491 = vst [vmem:[%s1051_s20 + $0xf0] sm:$0xff] %v427_v4  ;;  %v430_v16 = vsub.f32 1.0, %v366_v5  ;;  %v369_v17 = vadd.f32 %v305_v14, %v241_v13  ;;  %v306_v18 = vld [vmem:[%s1029_s5 + $0x128] sm:$0xff]  ;;  %v307_v20 = vld [vmem:[%s1029_s5 + $0x130] sm:$0xff]  ;;  %492 = vst [vmem:[%s1051_s20 + $0xf8] sm:$0xff] %v428_v9  ;;  %v431_v21 = vsub.f32 1.0, %v367_v11 }
  0x6b   : > { %493 = vst [vmem:[%s1051_s20 + $0x100] sm:$0xff] %v429_v10  ;;  %v432_v22 = vsub.f32 1.0, %v368_v12  ;;  %v370_v23 = vadd.f32 %v306_v18, %v242_v15  ;;  %v371_v24 = vadd.f32 %v307_v20, %v243_v19  ;;  %v244_v25 = vld [vmem:[%s1021_s3 + $0x138] sm:$0xff]  ;;  %v245_v27 = vld [vmem:[%s1021_s3 + $0x140] sm:$0xff]  ;;  %v246_v31 = vld [vmem:[%s1021_s3 + $0x148] sm:$0xff] }
  0x6c   : > { %v308_v26 = vld [vmem:[%s1029_s5 + $0x138] sm:$0xff]  ;;  %494 = vst [vmem:[%s1051_s20 + $0x108] sm:$0xff] %v430_v16  ;;  %v433_v28 = vsub.f32 1.0, %v369_v17  ;;  %v309_v30 = vld [vmem:[%s1029_s5 + $0x140] sm:$0xff]  ;;  %v310_v32 = vld [vmem:[%s1029_s5 + $0x148] sm:$0xff] }
  0x6d   : > { %v372_v29 = vadd.f32 %v308_v26, %v244_v25  ;;  %495 = vst [vmem:[%s1051_s20 + $0x110] sm:$0xff] %v431_v21  ;;  %496 = vst [vmem:[%s1051_s20 + $0x118] sm:$0xff] %v432_v22  ;;  %v434_v33 = vsub.f32 1.0, %v370_v23  ;;  %v435_v34 = vsub.f32 1.0, %v371_v24  ;;  %v373_v35 = vadd.f32 %v309_v30, %v245_v27  ;;  %v247_v37 = vld [vmem:[%s1021_s3 + $0x150] sm:$0xff]  ;;  %v248_v39 = vld [vmem:[%s1021_s3 + $0x158] sm:$0xff] }
  0x6e   : > { %v374_v36 = vadd.f32 %v310_v32, %v246_v31  ;;  %v311_v38 = vld [vmem:[%s1029_s5 + $0x150] sm:$0xff]  ;;  %497 = vst [vmem:[%s1051_s20 + $0x120] sm:$0xff] %v433_v28  ;;  %v312_v42 = vld [vmem:[%s1029_s5 + $0x158] sm:$0xff]  ;;  %v249_v43 = vld [vmem:[%s1021_s3 + $0x160] sm:$0xff] }
  0x6f   : > { %v436_v40 = vsub.f32 1.0, %v372_v29  ;;  %v375_v41 = vadd.f32 %v311_v38, %v247_v37  ;;  %v313_v44 = vld [vmem:[%s1029_s5 + $0x160] sm:$0xff]  ;;  %498 = vst [vmem:[%s1051_s20 + $0x128] sm:$0xff] %v434_v33  ;;  %499 = vst [vmem:[%s1051_s20 + $0x130] sm:$0xff] %v435_v34  ;;  %v437_v45 = vsub.f32 1.0, %v373_v35  ;;  %v376_v47 = vadd.f32 %v312_v42, %v248_v39  ;;  %v250_v49 = vld [vmem:[%s1021_s3 + $0x168] sm:$0xff] }
  0x70   : > { %v438_v46 = vsub.f32 1.0, %v374_v36  ;;  %v377_v48 = vadd.f32 %v313_v44, %v249_v43  ;;  %v314_v50 = vld [vmem:[%s1029_s5 + $0x168] sm:$0xff]  ;;  %v251_v51 = vld [vmem:[%s1021_s3 + $0x170] sm:$0xff]  ;;  %v252_v55 = vld [vmem:[%s1021_s3 + $0x178] sm:$0xff] }
  0x71   : > { %500 = vst [vmem:[%s1051_s20 + $0x138] sm:$0xff] %v436_v40  ;;  %v439_v52 = vsub.f32 1.0, %v375_v41  ;;  %v378_v53 = vadd.f32 %v314_v50, %v250_v49  ;;  %v315_v54 = vld [vmem:[%s1029_s5 + $0x170] sm:$0xff]  ;;  %v316_v56 = vld [vmem:[%s1029_s5 + $0x178] sm:$0xff]  ;;  %501 = vst [vmem:[%s1051_s20 + $0x140] sm:$0xff] %v437_v45  ;;  %v440_v57 = vsub.f32 1.0, %v376_v47 }
  0x72   : > { %502 = vst [vmem:[%s1051_s20 + $0x148] sm:$0xff] %v438_v46  ;;  %v441_v58 = vsub.f32 1.0, %v377_v48  ;;  %v379_v59 = vadd.f32 %v315_v54, %v251_v51  ;;  %v380_v60 = vadd.f32 %v316_v56, %v252_v55  ;;  %v253_v61 = vld [vmem:[%s1021_s3 + $0x180] sm:$0xff]  ;;  %v254_v63 = vld [vmem:[%s1021_s3 + $0x188] sm:$0xff]  ;;  %v255_v3 = vld [vmem:[%s1021_s3 + $0x190] sm:$0xff] }
  0x73   : > { %v317_v62 = vld [vmem:[%s1029_s5 + $0x180] sm:$0xff]  ;;  %503 = vst [vmem:[%s1051_s20 + $0x150] sm:$0xff] %v439_v52  ;;  %v442_v0 = vsub.f32 1.0, %v378_v53  ;;  %v318_v2 = vld [vmem:[%s1029_s5 + $0x188] sm:$0xff]  ;;  %v319_v4 = vld [vmem:[%s1029_s5 + $0x190] sm:$0xff] }
  0x74   : > { %v381_v1 = vadd.f32 %v317_v62, %v253_v61  ;;  %504 = vst [vmem:[%s1051_s20 + $0x158] sm:$0xff] %v440_v57  ;;  %505 = vst [vmem:[%s1051_s20 + $0x160] sm:$0xff] %v441_v58  ;;  %v443_v5 = vsub.f32 1.0, %v379_v59  ;;  %v444_v6 = vsub.f32 1.0, %v380_v60  ;;  %v382_v7 = vadd.f32 %v318_v2, %v254_v63  ;;  %v256_v9 = vld [vmem:[%s1021_s3 + $0x198] sm:$0xff]  ;;  %v257_v11 = vld [vmem:[%s1021_s3 + $0x1a0] sm:$0xff] }
  0x75   : > { %v383_v8 = vadd.f32 %v319_v4, %v255_v3  ;;  %v320_v10 = vld [vmem:[%s1029_s5 + $0x198] sm:$0xff]  ;;  %506 = vst [vmem:[%s1051_s20 + $0x168] sm:$0xff] %v442_v0  ;;  %v321_v14 = vld [vmem:[%s1029_s5 + $0x1a0] sm:$0xff]  ;;  %v258_v15 = vld [vmem:[%s1021_s3 + $0x1a8] sm:$0xff] }
  0x76   : > { %v445_v12 = vsub.f32 1.0, %v381_v1  ;;  %v384_v13 = vadd.f32 %v320_v10, %v256_v9  ;;  %v322_v16 = vld [vmem:[%s1029_s5 + $0x1a8] sm:$0xff]  ;;  %507 = vst [vmem:[%s1051_s20 + $0x170] sm:$0xff] %v443_v5  ;;  %508 = vst [vmem:[%s1051_s20 + $0x178] sm:$0xff] %v444_v6  ;;  %v446_v17 = vsub.f32 1.0, %v382_v7  ;;  %v385_v19 = vadd.f32 %v321_v14, %v257_v11  ;;  %v259_v21 = vld [vmem:[%s1021_s3 + $0x1b0] sm:$0xff] }
  0x77   : > { %v447_v18 = vsub.f32 1.0, %v383_v8  ;;  %v386_v20 = vadd.f32 %v322_v16, %v258_v15  ;;  %v323_v22 = vld [vmem:[%s1029_s5 + $0x1b0] sm:$0xff]  ;;  %v260_v23 = vld [vmem:[%s1021_s3 + $0x1b8] sm:$0xff]  ;;  %v261_v27 = vld [vmem:[%s1021_s3 + $0x1c0] sm:$0xff] }
  0x78   : > { %509 = vst [vmem:[%s1051_s20 + $0x180] sm:$0xff] %v445_v12  ;;  %v448_v24 = vsub.f32 1.0, %v384_v13  ;;  %v387_v25 = vadd.f32 %v323_v22, %v259_v21  ;;  %v324_v26 = vld [vmem:[%s1029_s5 + $0x1b8] sm:$0xff]  ;;  %v325_v28 = vld [vmem:[%s1029_s5 + $0x1c0] sm:$0xff]  ;;  %510 = vst [vmem:[%s1051_s20 + $0x188] sm:$0xff] %v446_v17  ;;  %v449_v29 = vsub.f32 1.0, %v385_v19 }
  0x79   : > { %511 = vst [vmem:[%s1051_s20 + $0x190] sm:$0xff] %v447_v18  ;;  %v450_v30 = vsub.f32 1.0, %v386_v20  ;;  %v388_v31 = vadd.f32 %v324_v26, %v260_v23  ;;  %v389_v32 = vadd.f32 %v325_v28, %v261_v27  ;;  %v262_v33 = vld [vmem:[%s1021_s3 + $0x1c8] sm:$0xff]  ;;  %v263_v35 = vld [vmem:[%s1021_s3 + $0x1d0] sm:$0xff]  ;;  %v264_v39 = vld [vmem:[%s1021_s3 + $0x1d8] sm:$0xff] }
  0x7a   : > { %v326_v34 = vld [vmem:[%s1029_s5 + $0x1c8] sm:$0xff]  ;;  %512 = vst [vmem:[%s1051_s20 + $0x198] sm:$0xff] %v448_v24  ;;  %v451_v36 = vsub.f32 1.0, %v387_v25  ;;  %v327_v38 = vld [vmem:[%s1029_s5 + $0x1d0] sm:$0xff]  ;;  %v328_v40 = vld [vmem:[%s1029_s5 + $0x1d8] sm:$0xff] }
  0x7b   : > { %v390_v37 = vadd.f32 %v326_v34, %v262_v33  ;;  %513 = vst [vmem:[%s1051_s20 + $0x1a0] sm:$0xff] %v449_v29  ;;  %514 = vst [vmem:[%s1051_s20 + $0x1a8] sm:$0xff] %v450_v30  ;;  %v452_v41 = vsub.f32 1.0, %v388_v31  ;;  %v453_v42 = vsub.f32 1.0, %v389_v32  ;;  %v391_v43 = vadd.f32 %v327_v38, %v263_v35  ;;  %v265_v45 = vld [vmem:[%s1021_s3 + $0x1e0] sm:$0xff]  ;;  %v266_v47 = vld [vmem:[%s1021_s3 + $0x1e8] sm:$0xff] }
  0x7c   : > { %v392_v44 = vadd.f32 %v328_v40, %v264_v39  ;;  %v329_v46 = vld [vmem:[%s1029_s5 + $0x1e0] sm:$0xff]  ;;  %515 = vst [vmem:[%s1051_s20 + $0x1b0] sm:$0xff] %v451_v36  ;;  %v330_v50 = vld [vmem:[%s1029_s5 + $0x1e8] sm:$0xff]  ;;  %v267_v51 = vld [vmem:[%s1021_s3 + $0x1f0] sm:$0xff] }
  0x7d   : > { %v454_v48 = vsub.f32 1.0, %v390_v37  ;;  %v393_v49 = vadd.f32 %v329_v46, %v265_v45  ;;  %v331_v52 = vld [vmem:[%s1029_s5 + $0x1f0] sm:$0xff]  ;;  %516 = vst [vmem:[%s1051_s20 + $0x1b8] sm:$0xff] %v452_v41  ;;  %517 = vst [vmem:[%s1051_s20 + $0x1c0] sm:$0xff] %v453_v42  ;;  %v455_v53 = vsub.f32 1.0, %v391_v43  ;;  %v394_v55 = vadd.f32 %v330_v50, %v266_v47  ;;  %v268_v57 = vld [vmem:[%s1021_s3 + $0x1f8] sm:$0xff] }
  0x7e   : > { %v456_v54 = vsub.f32 1.0, %v392_v44  ;;  %v395_v56 = vadd.f32 %v331_v52, %v267_v51  ;;  %v332_v58 = vld [vmem:[%s1029_s5 + $0x1f8] sm:$0xff] }
  0x7f   : > { %518 = vst [vmem:[%s1051_s20 + $0x1c8] sm:$0xff] %v454_v48  ;;  %v457_v59 = vsub.f32 1.0, %v393_v49  ;;  %v396_v60 = vadd.f32 %v332_v58, %v268_v57  ;;  %519 = vst [vmem:[%s1051_s20 + $0x1d0] sm:$0xff] %v455_v53  ;;  %v458_v61 = vsub.f32 1.0, %v394_v55 }
  0x80   : > { %520 = vst [vmem:[%s1051_s20 + $0x1d8] sm:$0xff] %v456_v54  ;;  %v459_v62 = vsub.f32 1.0, %v395_v56 }
  0x81   : > { %521 = vst [vmem:[%s1051_s20 + $0x1e0] sm:$0xff] %v457_v59  ;;  %v460_v63 = vsub.f32 1.0, %v396_v60  ;;  %522 = vst [vmem:[%s1051_s20 + $0x1e8] sm:$0xff] %v458_v61 }
  0x82   : > { %523 = vst [vmem:[%s1051_s20 + $0x1f0] sm:$0xff] %v459_v62 }
  0x83   : > { %524 = vst [vmem:[%s1051_s20 + $0x1f8] sm:$0xff] %v460_v63 }
  0x84   : > { %780 = shalt.err (!%p777_p3)
}
  0x85   : > { %s781_s25 = scalar_lea.hbm %s1231_s28, 8192  ;;  %s785_s30 = scalar_lea.hbm %s1281_s2, 32768 }
  0x86   : > { %p782_p10 = scmp.ne.s32.totalorder %s1231_s28, %s781_s25  ;;  %p786_p5 = scmp.lt.s32.totalorder %s1231_s28, %s1281_s2 }
  0x87   : > { %p787_p8 = scmp.lt.s32.totalorder %s785_s30, %s781_s25 }
  0x88   : > { %p783_p11 = pnand %p782_p10, %p1291_p0 }
  0x89   : > { %p788_p6 = por %p787_p8, %p786_p5 }
  0x8a   : > { %p784_p4 = pneg %p783_p11 }
  0x8c   : > { %p789_p12 = pnand %p788_p6, %p784_p4 }
  0x8e   : > { %792 = shalt.err (!%p789_p12)
}
  0x8f   : > { %s842_s29 = smov 128   ;;  %s843_s5 = smov 8  }
  0x90   : > { %660 = dma.vmem_to_hbm [thread:$0]  (%p1291_p0), %s1233_s14, 8192, %s1231_s28, %s526_s19, %s842_s29, %s842_s29, %s843_s5  }
  0x91 PF: > { %p674_p2 = scmp.ge.s32.totalorder %s835_s12, 2  ;;  %s554_s20 = sand.u32 1, %s823_s9  }
  0x92   : > { %p1292_p7 = scmp.ne.s32.totalorder %s1287_s22, 0  ;;  %s555_s6 = scalar_lea.sflag [#allocation4], %s554_s20 }
  0x94   : > { %p670_p9 = pnand %p674_p2, %p1292_p7 }
  0x96   : > { %p671_p13 = pneg %p670_p9 }
  0x98   : > { %818 = dma.done.wait (%p671_p13), %s555_s6, 8192  }
  0x99   : > { %820 = vsyncadd (%p671_p13), %s555_s6, 4294959104  ;;  %p18_p1 = scmp.ge.s32.totalorder %s884_s15, 6   ;;  %s1293_s9 = smov %s827_s10 }
  0x9a   : > { %s1294_s10 = smov %s831_s11  ;;  %s1295_s11 = smov %s896_s18 }
  0x9b   : > { %s1296_s12 = smov %s884_s15  ;;  %20 = sbr.rel (!%p18_p1) target bundleno = 7 (0x7), region = 86 }
  0xa0   :  { %560 = vsyncpa [#allocation3], 1 }
  0xa1   :  { %562 = vsyncpa [#allocation3 + $0x1], 1 }
  0xa2   :  { %563 = vsyncpa [#allocation6], 1 }
  0xa3   :  { %565 = vsyncpa [#allocation6 + $0x1], 1 }
  0xa4   :  { %566 = vsyncpa [#allocation4], 1 }
  0xa5   :  { %568 = vsyncpa [#allocation4 + $0x1], 1 }

</bundles_post_ra>
